<compile_context>
chip_gen: v7x
topology: tpu7x:2x2x1
jax: 0.10.0
libtpu: 0.0.40
codegen_flags: <defaults>
</compile_context>

<pallas_src>
import functools
import math

import jax
import jax.numpy as jnp
from jax.experimental import pallas as pl
from jax.experimental.pallas import tpu as pltpu

_INV_SQRT2 = 1.0 / math.sqrt(2.0)


def _round_up(a: int, b: int) -> int:
    return (a + b - 1) // b * b


# ----------------------------------------------------------------------------
# Fused kernel: transform (dense + GELU + LayerNorm) into VMEM scratch at the
# first vocab step, then decoder matmul + bias for the current vocab tile.
# Grid = (row tiles [parallel], vocab tiles [arbitrary]); the h scratch is
# computed once per row tile and reused across every vocab tile (never
# round-trips through HBM).
# ----------------------------------------------------------------------------
def mlm_head_kernel(x_ref, dw_ref, db_ref, g_ref, b_ref, decw_ref, decb_ref,
                    o_ref, h_scratch, *, ln_eps):
    j = pl.program_id(1)  # vocab-tile index (inner, "arbitrary" axis)

    @pl.when(j == 0)
    def _():
        # ---- BertPredictionHeadTransform on this row tile ----
        x = x_ref[...]                               # bf16 [tm, H]
        h = jnp.dot(x, dw_ref[...], preferred_element_type=jnp.float32)
        h = h + db_ref[...]                          # bias in f32
        # exact GELU: x * 0.5 * (1 + erf(x / sqrt(2)))  (torch F.gelu default)
        h = h * 0.5 * (1.0 + jax.lax.erf(h * _INV_SQRT2))
        # LayerNorm over hidden axis (f32 math)
        mean = jnp.mean(h, axis=-1, keepdims=True)
        var = jnp.mean(jnp.square(h - mean), axis=-1, keepdims=True)
        inv = jax.lax.rsqrt(var + ln_eps)
        h = (h - mean) * inv * g_ref[...] + b_ref[...]
        h_scratch[...] = h.astype(jnp.bfloat16)      # keep hot in VMEM (bf16)

    # ---- decoder: [tm, H] @ [H, tv] + bias ----
    acc = jnp.dot(h_scratch[...], decw_ref[...],
                  preferred_element_type=jnp.float32)
    o_ref[...] = (acc + decb_ref[...]).astype(o_ref.dtype)


# ----------------------------------------------------------------------------
# One-time weight preparation (cast + pad). Call once at init, NOT per forward.
# ----------------------------------------------------------------------------
def prepare_params(params, *, tv=1024):
    H, V = params["decoder_w"].shape
    tv = min(tv, _round_up(V, 128))
    Vp = _round_up(V, tv)

    decoder_w = params["decoder_w"].astype(jnp.bfloat16)   # [H, V]
    decoder_b = params["decoder_b"].astype(jnp.float32)    # [1, V]
    if Vp != V:
        # padded columns are zero weights / zero bias -> numerically inert
        decoder_w = jnp.pad(decoder_w, ((0, 0), (0, Vp - V)))
        decoder_b = jnp.pad(decoder_b, ((0, 0), (0, Vp - V)))

    return {
        "dense_w": params["dense_w"].astype(jnp.bfloat16),   # [H, H] (in, out)
        "dense_b": params["dense_b"].astype(jnp.float32),    # [1, H]
        "ln_gamma": params["ln_gamma"].astype(jnp.float32),  # [1, H]
        "ln_beta": params["ln_beta"].astype(jnp.float32),    # [1, H]
        "decoder_w": decoder_w,                              # [H, Vp] bf16
        "decoder_b": decoder_b,                              # [1, Vp] f32
        "ln_eps": float(params["ln_eps"]),
        "vocab_size": int(V),
        "tv": int(tv),
    }


def bert_only_mlm_head(x, prepared, *, tm=1024, out_dtype=jnp.bfloat16,
                       vmem_limit_bytes=48 * 1024 * 1024):
    """x: [B, S, H] float32 -> prediction_scores: [B, S, V] in out_dtype."""
    B, S, H = x.shape
    V = prepared["vocab_size"]
    tv = prepared["tv"]
    Vp = prepared["decoder_w"].shape[1]
    M = B * S

    # bf16 x: halves the x HBM read and (more importantly) the x tile VMEM.
    x2 = x.reshape(M, H).astype(jnp.bfloat16)

    # Row tile selection:
    #  * as large as requested (decoder_w restream scales as M/tm),
    #  * but keep >= 2 row tiles when there are enough rows (v7x megacore
    #    shards the "parallel" axis across its 2 TensorCores),
    #  * and a multiple of 16 (bf16 h-scratch / bf16 output sublane packing).
    half = _round_up(-(-M // 2), 16)
    tm = min(tm, max(16, half))
    Mp = _round_up(M, tm)
    if Mp != M:
        x2 = jnp.pad(x2, ((0, Mp - M), (0, 0)))

    grid = (Mp // tm, Vp // tv)
    n_row_tiles = grid[0]
    out_bytes = jnp.dtype(out_dtype).itemsize

    cost = pl.CostEstimate(
        flops=2 * Mp * H * H + 2 * Mp * H * Vp,
        transcendentals=Mp * H,
        bytes_accessed=(Mp * H * 2                     # x (bf16)
                        + H * H * 2                    # dense_w (bf16, resident)
                        + n_row_tiles * H * Vp * 2     # decoder_w re-streamed per row tile
                        + n_row_tiles * Vp * 4         # decoder_b per row tile
                        + Mp * Vp * out_bytes          # output
                        + 3 * H * 4),                  # small LN / bias vectors
    )

    kernel = functools.partial(mlm_head_kernel, ln_eps=prepared["ln_eps"])

    scores = pl.pallas_call(
        kernel,
        out_shape=jax.ShapeDtypeStruct((Mp, Vp), out_dtype),
        grid_spec=pltpu.PrefetchScalarGridSpec(
            num_scalar_prefetch=0,
            grid=grid,
            in_specs=[
                pl.BlockSpec((tm, H), lambda i, j: (i, 0)),    # x row tile (bf16)
                pl.BlockSpec((H, H), lambda i, j: (0, 0)),     # dense_w (resident)
                pl.BlockSpec((1, H), lambda i, j: (0, 0)),     # dense_b
                pl.BlockSpec((1, H), lambda i, j: (0, 0)),     # ln_gamma
                pl.BlockSpec((1, H), lambda i, j: (0, 0)),     # ln_beta
                pl.BlockSpec((H, tv), lambda i, j: (0, j)),    # decoder_w tile
                pl.BlockSpec((1, tv), lambda i, j: (0, j)),    # decoder_b tile
            ],
            out_specs=pl.BlockSpec((tm, tv), lambda i, j: (i, j)),
            scratch_shapes=[pltpu.VMEM((tm, H), jnp.bfloat16)],  # h tile
        ),
        compiler_params=pltpu.CompilerParams(
            dimension_semantics=("parallel", "arbitrary"),
            vmem_limit_bytes=vmem_limit_bytes),
        cost_estimate=cost,
    )(x2, prepared["dense_w"], prepared["dense_b"], prepared["ln_gamma"],
      prepared["ln_beta"], prepared["decoder_w"], prepared["decoder_b"])

    return scores[:M, :V].reshape(B, S, V)


def init_params(key, hidden_size, vocab_size, layer_norm_eps=1e-12):
    k1, k2, k3 = jax.random.split(key, 3)
    scale = 0.02
    return {
        # stored as (in, out) — equivalent to torch Linear weight^T
        "dense_w": scale * jax.random.normal(k1, (hidden_size, hidden_size), jnp.float32),
        "dense_b": scale * jax.random.normal(k2, (1, hidden_size), jnp.float32),
        "ln_gamma": jnp.ones((1, hidden_size), jnp.float32),
        "ln_beta": jnp.zeros((1, hidden_size), jnp.float32),
        "decoder_w": scale * jax.random.normal(k3, (hidden_size, vocab_size), jnp.float32),
        # decoder.bias is tied to predictions.bias, initialized to zeros in torch
        "decoder_b": jnp.zeros((1, vocab_size), jnp.float32),
        "ln_eps": layer_norm_eps,
    }


if __name__ == "__main__":
    # Small shapes; V deliberately not a multiple of 128 to exercise padding.
    B, S, H, V = 2, 8, 128, 300
    key = jax.random.PRNGKey(0)
    kx, kp = jax.random.split(key)
    x = jax.random.normal(kx, (B, S, H), jnp.float32)
    params = init_params(kp, H, V)

    prepared = prepare_params(params, tv=1024)     # one-time cast + pad
    out = bert_only_mlm_head(x, prepared, tm=1024)
    jax.block_until_ready(out)

    # Pure-JAX reference with the same bf16 matmul / f32 accumulate recipe.
    x2 = x.reshape(B * S, H)
    dwb = params["dense_w"].astype(jnp.bfloat16)
    h_ref = jnp.dot(x2.astype(jnp.bfloat16), dwb,
                    preferred_element_type=jnp.float32) + params["dense_b"]
    h_ref = h_ref * 0.5 * (1.0 + jax.lax.erf(h_ref * _INV_SQRT2))
    mu = h_ref.mean(-1, keepdims=True)
    var = ((h_ref - mu) ** 2).mean(-1, keepdims=True)
    h_ref = (h_ref - mu) * jax.lax.rsqrt(var + params["ln_eps"])
    h_ref = h_ref * params["ln_gamma"] + params["ln_beta"]
    ref = jnp.dot(h_ref.astype(jnp.bfloat16),
                  params["decoder_w"].astype(jnp.bfloat16),
                  preferred_element_type=jnp.float32) + params["decoder_b"]
    ref = ref.reshape(B, S, V)

    assert jnp.allclose(out.astype(jnp.float32), ref, atol=2e-2, rtol=2e-2), \
        "mismatch vs reference"
    print("KERNEL_OK")
</pallas_src>

<mosaic_0001>
module attributes {stable_mosaic.version = 11 : i64} {
  func.func @mlm_head_kernel(%arg0: i32, %arg1: i32, %arg2: memref<16x128xbf16, #tpu.memory_space<vmem>>, %arg3: memref<128x128xbf16, #tpu.memory_space<vmem>>, %arg4: memref<1x128xf32, #tpu.memory_space<vmem>>, %arg5: memref<1x128xf32, #tpu.memory_space<vmem>>, %arg6: memref<1x128xf32, #tpu.memory_space<vmem>>, %arg7: memref<128x384xbf16, #tpu.memory_space<vmem>>, %arg8: memref<1x384xf32, #tpu.memory_space<vmem>>, %arg9: memref<16x384xbf16, #tpu.memory_space<vmem>>, %arg10: memref<16x128xbf16, #tpu.memory_space<vmem>>) attributes {dimension_semantics = [#tpu.dimension_semantics<parallel>, #tpu.dimension_semantics<arbitrary>], iteration_bounds = array<i64: 1, 1>, scalar_prefetch = 0 : i64, scratch_operands = 1 : i64, tpu.core_type = #tpu.core_type<tc>, window_params = [{transform_indices = @transform_0, window_bounds = array<i64: 16, 128>}, {pipeline_mode = #tpu.pipeline_mode<synchronous>, transform_indices = @transform_1, window_bounds = array<i64: 128, 128>}, {pipeline_mode = #tpu.pipeline_mode<synchronous>, transform_indices = @transform_2, window_bounds = array<i64: 1, 128>}, {pipeline_mode = #tpu.pipeline_mode<synchronous>, transform_indices = @transform_3, window_bounds = array<i64: 1, 128>}, {pipeline_mode = #tpu.pipeline_mode<synchronous>, transform_indices = @transform_4, window_bounds = array<i64: 1, 128>}, {transform_indices = @transform_5, window_bounds = array<i64: 128, 384>}, {transform_indices = @transform_6, window_bounds = array<i64: 1, 384>}, {transform_indices = @transform_7, window_bounds = array<i64: 16, 384>}]} {
    %c0_i32 = arith.constant 0 : i32
    %0 = arith.cmpi eq, %arg1, %c0_i32 : i32
    %1 = arith.extui %0 : i1 to i32
    %c0_i32_0 = arith.constant 0 : i32
    %2 = arith.cmpi ne, %1, %c0_i32_0 : i32
    scf.if %2 {
      %c0_8 = arith.constant 0 : index
      %c0_9 = arith.constant 0 : index
      %11 = vector.load %arg2[%c0_8, %c0_9] : memref<16x128xbf16, #tpu.memory_space<vmem>>, vector<16x128xbf16>
      %c0_10 = arith.constant 0 : index
      %c0_11 = arith.constant 0 : index
      %12 = vector.load %arg3[%c0_10, %c0_11] : memref<128x128xbf16, #tpu.memory_space<vmem>>, vector<128x128xbf16>
      %cst_12 = arith.constant dense<0.000000e+00> : vector<16x128xf32>
      %13 = tpu.matmul %11, %12, %cst_12 {dimension_numbers = #tpu.dot_dimension_numbers<[1], [0], [0], [1], [0, 0, 1, 1], [], []>} : vector<16x128xbf16>, vector<128x128xbf16>, vector<16x128xf32> -> vector<16x128xf32>
      %c0_13 = arith.constant 0 : index
      %c0_14 = arith.constant 0 : index
      %14 = vector.load %arg4[%c0_13, %c0_14] : memref<1x128xf32, #tpu.memory_space<vmem>>, vector<1x128xf32>
      %15 = vector.broadcast %14 : vector<1x128xf32> to vector<16x128xf32>
      %16 = arith.addf %13, %15 : vector<16x128xf32>
      %cst_15 = arith.constant 5.000000e-01 : f32
      %17 = vector.broadcast %cst_15 : f32 to vector<16x128xf32>
      %18 = arith.mulf %16, %17 : vector<16x128xf32>
      %cst_16 = arith.constant 0.707106769 : f32
      %19 = vector.broadcast %cst_16 : f32 to vector<16x128xf32>
      %20 = arith.mulf %16, %19 : vector<16x128xf32>
      %21 = math.erf %20 : vector<16x128xf32>
      %cst_17 = arith.constant 1.000000e+00 : f32
      %22 = vector.broadcast %cst_17 : f32 to vector<16x128xf32>
      %23 = arith.addf %22, %21 : vector<16x128xf32>
      %24 = arith.mulf %18, %23 : vector<16x128xf32>
      %cst_18 = arith.constant dense<0.000000e+00> : vector<16xf32>
      %25 = vector.multi_reduction <add>, %24, %cst_18 [1] : vector<16x128xf32> to vector<16xf32>
      %26 = vector.shape_cast %25 : vector<16xf32> to vector<16x1xf32>
      %cst_19 = arith.constant 1.280000e+02 : f32
      %27 = vector.broadcast %cst_19 : f32 to vector<16x1xf32>
      %28 = arith.divf %26, %27 : vector<16x1xf32>
      %29 = vector.broadcast %28 : vector<16x1xf32> to vector<16x128xf32>
      %30 = arith.subf %24, %29 : vector<16x128xf32>
      %31 = arith.mulf %30, %30 : vector<16x128xf32>
      %cst_20 = arith.constant dense<0.000000e+00> : vector<16xf32>
      %32 = vector.multi_reduction <add>, %31, %cst_20 [1] : vector<16x128xf32> to vector<16xf32>
      %33 = vector.shape_cast %32 : vector<16xf32> to vector<16x1xf32>
      %cst_21 = arith.constant 1.280000e+02 : f32
      %34 = vector.broadcast %cst_21 : f32 to vector<16x1xf32>
      %35 = arith.divf %33, %34 : vector<16x1xf32>
      %cst_22 = arith.constant 9.99999996E-13 : f32
      %36 = vector.broadcast %cst_22 : f32 to vector<16x1xf32>
      %37 = arith.addf %35, %36 : vector<16x1xf32>
      %38 = math.rsqrt %37 : vector<16x1xf32>
      %39 = vector.broadcast %28 : vector<16x1xf32> to vector<16x128xf32>
      %40 = arith.subf %24, %39 : vector<16x128xf32>
      %41 = vector.broadcast %38 : vector<16x1xf32> to vector<16x128xf32>
      %42 = arith.mulf %40, %41 : vector<16x128xf32>
      %c0_23 = arith.constant 0 : index
      %c0_24 = arith.constant 0 : index
      %43 = vector.load %arg5[%c0_23, %c0_24] : memref<1x128xf32, #tpu.memory_space<vmem>>, vector<1x128xf32>
      %44 = vector.broadcast %43 : vector<1x128xf32> to vector<16x128xf32>
      %45 = arith.mulf %42, %44 : vector<16x128xf32>
      %c0_25 = arith.constant 0 : index
      %c0_26 = arith.constant 0 : index
      %46 = vector.load %arg6[%c0_25, %c0_26] : memref<1x128xf32, #tpu.memory_space<vmem>>, vector<1x128xf32>
      %47 = vector.broadcast %46 : vector<1x128xf32> to vector<16x128xf32>
      %48 = arith.addf %45, %47 : vector<16x128xf32>
      %49 = arith.truncf %48 : vector<16x128xf32> to vector<16x128xbf16>
      %c0_27 = arith.constant 0 : index
      %c0_28 = arith.constant 0 : index
      %50 = vector.load %arg10[%c0_27, %c0_28] : memref<16x128xbf16, #tpu.memory_space<vmem>>, vector<16x128xbf16>
      tpu.vector_store %arg10[%c0_27, %c0_28], %49 {strides = array<i32>} : memref<16x128xbf16, #tpu.memory_space<vmem>>, vector<16x128xbf16>,
    } else {
    }
    %c0 = arith.constant 0 : index
    %c0_1 = arith.constant 0 : index
    %3 = vector.load %arg10[%c0, %c0_1] : memref<16x128xbf16, #tpu.memory_space<vmem>>, vector<16x128xbf16>
    %c0_2 = arith.constant 0 : index
    %c0_3 = arith.constant 0 : index
    %4 = vector.load %arg7[%c0_2, %c0_3] : memref<128x384xbf16, #tpu.memory_space<vmem>>, vector<128x384xbf16>
    %cst = arith.constant dense<0.000000e+00> : vector<16x384xf32>
    %5 = tpu.matmul %3, %4, %cst {dimension_numbers = #tpu.dot_dimension_numbers<[1], [0], [0], [1], [0, 0, 1, 1], [], []>} : vector<16x128xbf16>, vector<128x384xbf16>, vector<16x384xf32> -> vector<16x384xf32>
    %c0_4 = arith.constant 0 : index
    %c0_5 = arith.constant 0 : index
    %6 = vector.load %arg8[%c0_4, %c0_5] : memref<1x384xf32, #tpu.memory_space<vmem>>, vector<1x384xf32>
    %7 = vector.broadcast %6 : vector<1x384xf32> to vector<16x384xf32>
    %8 = arith.addf %5, %7 : vector<16x384xf32>
    %9 = arith.truncf %8 : vector<16x384xf32> to vector<16x384xbf16>
    %c0_6 = arith.constant 0 : index
    %c0_7 = arith.constant 0 : index
    %10 = vector.load %arg9[%c0_6, %c0_7] : memref<16x384xbf16, #tpu.memory_space<vmem>>, vector<16x384xbf16>
    tpu.vector_store %arg9[%c0_6, %c0_7], %9 {strides = array<i32>} : memref<16x384xbf16, #tpu.memory_space<vmem>>, vector<16x384xbf16>,
    return
  }
  func.func @transform_0(%arg0: i32, %arg1: i32) -> (i32, i32) {
    %c0_i32 = arith.constant 0 : i32
    %c0_i32_0 = arith.constant 0 : i32
    return %arg0, %c0_i32 : i32, i32
  }
  func.func @transform_1(%arg0: i32, %arg1: i32) -> (i32, i32) {
    %c0_i32 = arith.constant 0 : i32
    %c0_i32_0 = arith.constant 0 : i32
    %c0_i32_1 = arith.constant 0 : i32
    return %c0_i32, %c0_i32_0 : i32, i32
  }
  func.func @transform_2(%arg0: i32, %arg1: i32) -> (i32, i32) {
    %c0_i32 = arith.constant 0 : i32
    %c0_i32_0 = arith.constant 0 : i32
    %c0_i32_1 = arith.constant 0 : i32
    return %c0_i32, %c0_i32_0 : i32, i32
  }
  func.func @transform_3(%arg0: i32, %arg1: i32) -> (i32, i32) {
    %c0_i32 = arith.constant 0 : i32
    %c0_i32_0 = arith.constant 0 : i32
    %c0_i32_1 = arith.constant 0 : i32
    return %c0_i32, %c0_i32_0 : i32, i32
  }
  func.func @transform_4(%arg0: i32, %arg1: i32) -> (i32, i32) {
    %c0_i32 = arith.constant 0 : i32
    %c0_i32_0 = arith.constant 0 : i32
    %c0_i32_1 = arith.constant 0 : i32
    return %c0_i32, %c0_i32_0 : i32, i32
  }
  func.func @transform_5(%arg0: i32, %arg1: i32) -> (i32, i32) {
    %c0_i32 = arith.constant 0 : i32
    %c0_i32_0 = arith.constant 0 : i32
    return %c0_i32, %arg1 : i32, i32
  }
  func.func @transform_6(%arg0: i32, %arg1: i32) -> (i32, i32) {
    %c0_i32 = arith.constant 0 : i32
    %c0_i32_0 = arith.constant 0 : i32
    return %c0_i32, %arg1 : i32, i32
  }
  func.func @transform_7(%arg0: i32, %arg1: i32) -> (i32, i32) {
    %c0_i32 = arith.constant 0 : i32
    return %arg0, %arg1 : i32, i32
  }
}

</mosaic_0001>

<bundles_post_ra>
// kernel: tpu_custom_call.1
= control target key start
LH: loop header
LB: loop body
LE: loop exit
PB: predicated region body
PF: predicated region fallthrough
CT: control target
= control target key end

     0   :  { %12 = vsyncpa [#allocation4], 0  ;;  %s960_s0 = inlined_call_operand.hbm [shape: bf16[16,128], index: 0, kind: input, shape index: {}]   ;;  %s961_s1 = inlined_call_operand.hbm [shape: bf16[128,128], index: 1, kind: input, shape index: {}]   ;;  %s962_s2 = inlined_call_operand.vmem [shape: f32[1,128], index: 2, kind: input, shape index: {}]   ;;  %s963_s3 = inlined_call_operand.vmem [shape: f32[1,128], index: 3, kind: input, shape index: {}]   ;;  %s964_s4 = inlined_call_operand.vmem [shape: f32[1,128], index: 4, kind: input, shape index: {}]   ;;  %s965_s5 = inlined_call_operand.hbm [shape: bf16[128,384], index: 5, kind: input, shape index: {}]   ;;  %s966_s6 = inlined_call_operand.vmem [shape: f32[1,384], index: 6, kind: input, shape index: {}]   ;;  %s967_s7 = inlined_call_operand.hbm [shape: bf16[16,384], index: 7, kind: output, shape index: {}]  }
   0x1   :  { %13 = vsyncpa [#allocation7], 0 }
   0x2   :  { %14 = vsyncpa [#allocation5], 0  ;;  %s806_s24 = smov [#allocation6]   ;;  %s807_s26 = smov [#allocation3]  }
   0x3   :  { %s32_s25 = sshll.u32 %s806_s24, 4  ;;  %s20_s27 = sshll.u32 %s807_s26, 4  ;;  %s33_s25 = int_to_ptr.vmem [resolvable:$true] %s32_s25  ;;  %s857_s27 = int_to_ptr.vmem [resolvable:$true] %s20_s27 }
   0x4   :  { %s712_s30 = scalar_lea.hbm %s961_s1, 1024 }
   0x5   :  { %p713_p0 = scmp.ne.s32.totalorder %s961_s1, %s712_s30  ;;  %p716_p1 = scmp.lt.u32.totalorder %s712_s30, %s961_s1 }
   0x7   :  { %p718_p2 = pnand %p716_p1, %p713_p0 }
   0x9   :  { %721 = shalt.err (!%p718_p2)
}
   0xa   :  { %s722_s12 = scalar_lea.vmem %s33_s25, 1024  ;;  %p727_p4 = scmp.lt.s32.totalorder %s33_s25, %s33_s25 }
   0xb   :  { %p723_p3 = scmp.ne.s32.totalorder %s33_s25, %s722_s12  ;;  %p728_p5 = scmp.lt.s32.totalorder %s722_s12, %s722_s12 }
   0xd   :  { %p729_p6 = por %p728_p5, %p727_p4 }
   0xf   :  { %p730_p7 = pnand %p729_p6, %p723_p3 }
  0x11   :  { %733 = shalt.err (!%p730_p7)
}
  0x12   :  { %s808_s13 = smov 64   ;;  %s809_s14 = smov 4  }
  0x13   :  { %38 = dma.hbm_to_vmem [thread:$0]  %s961_s1, 1024, %s33_s25, [#allocation7], %s808_s13, %s808_s13, %s809_s14  }
  0x14   :  { %s734_s19 = scalar_lea.hbm %s960_s0, 128 }
  0x15   :  { %p735_p8 = scmp.ne.s32.totalorder %s960_s0, %s734_s19  ;;  %p738_p9 = scmp.lt.u32.totalorder %s734_s19, %s960_s0 }
  0x17   :  { %p740_p10 = pnand %p738_p9, %p735_p8 }
  0x19   :  { %743 = shalt.err (!%p740_p10)
}
  0x1a   :  { %s744_s24 = scalar_lea.vmem %s857_s27, 128  ;;  %p749_p12 = scmp.lt.s32.totalorder %s857_s27, %s857_s27 }
  0x1b   :  { %p745_p11 = scmp.ne.s32.totalorder %s857_s27, %s744_s24  ;;  %p750_p13 = scmp.lt.s32.totalorder %s744_s24, %s744_s24 }
  0x1d   :  { %p751_p0 = por %p750_p13, %p749_p12 }
  0x1f   :  { %p752_p1 = pnand %p751_p0, %p745_p11 }
  0x21   :  { %755 = shalt.err (!%p752_p1)
}
  0x22   :  { %26 = dma.hbm_to_vmem [thread:$0]  %s960_s0, 128, %s857_s27, [#allocation4], %s808_s13, %s808_s13, %s809_s14  }
  0x23   :  { %s810_s26 = smov [#allocation8]   ;;  %s756_s8 = scalar_lea.hbm %s965_s5, 3072 }
  0x24   :  { %s50_s28 = sshll.u32 %s810_s26, 4  ;;  %p757_p2 = scmp.ne.s32.totalorder %s965_s5, %s756_s8  ;;  %s51_s28 = int_to_ptr.vmem [resolvable:$true] %s50_s28 }
  0x25   :  { %p760_p3 = scmp.lt.u32.totalorder %s756_s8, %s965_s5 }
  0x27   :  { %p762_p4 = pnand %p760_p3, %p757_p2 }
  0x29   :  { %765 = shalt.err (!%p762_p4)
}
  0x2a   :  { %s766_s15 = scalar_lea.vmem %s51_s28, 3072  ;;  %p771_p6 = scmp.lt.s32.totalorder %s51_s28, %s51_s28 }
  0x2b   :  { %p767_p5 = scmp.ne.s32.totalorder %s51_s28, %s766_s15  ;;  %p772_p7 = scmp.lt.s32.totalorder %s766_s15, %s766_s15 }
  0x2d   :  { %p773_p8 = por %p772_p7, %p771_p6 }
  0x2f   :  { %p774_p9 = pnand %p773_p8, %p767_p5 }
  0x31   :  { %777 = shalt.err (!%p774_p9)
}
  0x32   :  { %s811_s0 = smov 192   ;;  %s812_s27 = smov 12  }
  0x33   :  { %56 = dma.hbm_to_vmem [thread:$0]  %s965_s5, 3072, %s51_s28, [#allocation7], %s811_s0, %s811_s0, %s812_s27  }
  0x34   :  { %800 = dma.done.wait [#allocation4], 128  }
  0x35   :  { %801 = vsyncadd [#allocation4], 4294967168 }
  0x36   :  { %802 = dma.done.wait [#allocation7], 4096  }
  0x37   :  { %803 = vsyncadd [#allocation7], 4294963200  ;;  %v813_v0 = vmov 0.0   ;;  %vm814_vm0 = vmmov 0   ;;  %v663_v1 = vld [vmem:[#allocation6] sm:$0xff]   ;;  %v664_v2 = vld [vmem:[#allocation6 + $0x8] sm:$0xff]  }
  0x38   :  { %612 = vmatprep.subr.bf16.mxu0 %v813_v0  ;;  %628 = vmatprep.mubr.msk.bf16.mxu0 %vm814_vm0, %v813_v0  ;;  %v665_v3 = vld [vmem:[#allocation6 + $0x10] sm:$0xff]   ;;  %v666_v4 = vld [vmem:[#allocation6 + $0x18] sm:$0xff]   ;;  %v667_v5 = vld [vmem:[#allocation6 + $0x20] sm:$0xff]   ;;  %v815_v54 = vmov 0  }
  0x39   :  { %613 = vmatpush3.bf16.msra.mxu0 %v663_v1  ;;  %v668_v6 = vld [vmem:[#allocation6 + $0x28] sm:$0xff]   ;;  %v669_v7 = vld [vmem:[#allocation6 + $0x30] sm:$0xff]   ;;  %v670_v8 = vld [vmem:[#allocation6 + $0x38] sm:$0xff]   ;;  %456 = vmatprep.mubr.bf16.mxu1 %v815_v54 }
  0x3a   :  { %614 = vmatprep.subr.bf16.mxu0 %v813_v0  ;;  %v671_v9 = vld [vmem:[#allocation3] sm:$0xff]   ;;  %v672_v27 = vld [vmem:[#allocation8 + $0x4] ss:$12 sps:$4 sm:$0xff]   ;;  %v674_v28 = vld [vmem:[#allocation8] ss:$12 sps:$4 sm:$0xff]  }
  0x3b   :  { %v550_v10 = vld [vmem:[%s962_s2] ss:$0 sm:$0xff]  ;;  %v675_v29 = vld [vmem:[#allocation8 + $0x8] ss:$12 sps:$4 sm:$0xff]   ;;  %424 = vmatprep.subr.bf16.mxu1 %v672_v27  ;;  %v679_v40 = vld [vmem:[#allocation8 + $0x20] ss:$12 sps:$4 sm:$0xff]  }
  0x3c   :  { %v676_v30 = vld [vmem:[#allocation8 + $0x1c] ss:$12 sps:$4 sm:$0xff]   ;;  %425 = vmatpush1.bf16.msra.mxu1 %v674_v28  ;;  %v678_v39 = vld [vmem:[#allocation8 + $0x18] ss:$12 sps:$4 sm:$0xff]   ;;  %v680_v41 = vld [vmem:[#allocation8 + $0x34] ss:$12 sps:$4 sm:$0xff]  }
  0x3d   :  { %615 = vmatpush3.bf16.msra.mxu0 %v664_v2  ;;  %426 = vmatprep.subr.bf16.mxu1 %v676_v30  ;;  %v682_v42 = vld [vmem:[#allocation8 + $0x30] ss:$12 sps:$4 sm:$0xff]   ;;  %v683_v43 = vld [vmem:[#allocation8 + $0x38] ss:$12 sps:$4 sm:$0xff]   ;;  %v686_v45 = vld [vmem:[#allocation8 + $0x48] ss:$12 sps:$4 sm:$0xff]  }
  0x3e   :  { %616 = vmatprep.subr.bf16.mxu0 %v813_v0  ;;  %v684_v44 = vld [vmem:[#allocation8 + $0x4c] ss:$12 sps:$4 sm:$0xff]   ;;  %v687_v46 = vld [vmem:[#allocation8 + $0x50] ss:$12 sps:$4 sm:$0xff]   ;;  %v691_v49 = vld [vmem:[#allocation8 + $0x68] ss:$12 sps:$4 sm:$0xff]  }
  0x3f   :  { %v688_v47 = vld [vmem:[#allocation8 + $0x64] ss:$12 sps:$4 sm:$0xff]   ;;  %v690_v48 = vld [vmem:[#allocation8 + $0x60] ss:$12 sps:$4 sm:$0xff]   ;;  %v692_v50 = vld [vmem:[#allocation8 + $0x7c] ss:$12 sps:$4 sm:$0xff]  }
  0x40   :  { %427 = vmatpush1.bf16.msra.mxu1 %v678_v39  ;;  %v694_v51 = vld [vmem:[#allocation8 + $0x78] ss:$12 sps:$4 sm:$0xff]   ;;  %v695_v52 = vld [vmem:[#allocation8 + $0x80] ss:$12 sps:$4 sm:$0xff]   ;;  %v698_v55 = vld [vmem:[#allocation8 + $0x90] ss:$12 sps:$4 sm:$0xff]  }
  0x41   :  { %617 = vmatpush3.bf16.msra.mxu0 %v665_v3  ;;  %428 = vmatprep.subr.bf16.mxu1 %v680_v41  ;;  %v696_v53 = vld [vmem:[#allocation8 + $0x94] ss:$12 sps:$4 sm:$0xff]   ;;  %v699_v56 = vld [vmem:[#allocation8 + $0x98] ss:$12 sps:$4 sm:$0xff]   ;;  %v703_v59 = vld [vmem:[#allocation8 + $0xb0] ss:$12 sps:$4 sm:$0xff]  }
  0x42   :  { %618 = vmatprep.subr.bf16.mxu0 %v813_v0  ;;  %v700_v57 = vld [vmem:[#allocation8 + $0xac] ss:$12 sps:$4 sm:$0xff]   ;;  %v702_v58 = vld [vmem:[#allocation8 + $0xa8] ss:$12 sps:$4 sm:$0xff]  }
  0x44   :  { %429 = vmatpush1.bf16.msra.mxu1 %v682_v42 }
  0x45   :  { %619 = vmatpush3.bf16.msra.mxu0 %v666_v4  ;;  %430 = vmatprep.subr.bf16.mxu1 %v684_v44 }
  0x46   :  { %620 = vmatprep.subr.bf16.mxu0 %v813_v0 }
  0x48   :  { %431 = vmatpush1.bf16.msra.mxu1 %v686_v45 }
  0x49   :  { %621 = vmatpush3.bf16.msra.mxu0 %v667_v5  ;;  %432 = vmatprep.subr.bf16.mxu1 %v688_v47  ;;  %v560_v5 = vld [vmem:[%s963_s3] ss:$0 sm:$0xff] }
  0x4a   :  { %622 = vmatprep.subr.bf16.mxu0 %v813_v0 }
  0x4c   :  { %433 = vmatpush1.bf16.msra.mxu1 %v690_v48 }
  0x4d   :  { %623 = vmatpush3.bf16.msra.mxu0 %v668_v6  ;;  %434 = vmatprep.subr.bf16.mxu1 %v692_v50 }
  0x4e   :  { %624 = vmatprep.subr.bf16.mxu0 %v813_v0 }
  0x50   :  { %435 = vmatpush1.bf16.msra.mxu1 %v694_v51 }
  0x51   :  { %625 = vmatpush3.bf16.msra.mxu0 %v669_v7  ;;  %436 = vmatprep.subr.bf16.mxu1 %v696_v53 }
  0x52   :  { %626 = vmatprep.subr.bf16.mxu0 %v813_v0 }
  0x54   :  { %437 = vmatpush1.bf16.msra.mxu1 %v698_v55 }
  0x55   :  { %627 = vmatpush3.bf16.msra.mxu0 %v670_v8  ;;  %438 = vmatprep.subr.bf16.mxu1 %v700_v57  ;;  %v561_v8 = vld [vmem:[%s964_s4] ss:$0 sm:$0xff]  ;;  %s816_s4 = smov [#allocation9]  }
  0x56   :  { %632 = vmatprep.subr.bf16.mxu0 %v813_v0 }
  0x58   :  { %629 = vmatmul.mubr.bf16.vlgmr.msra.gmra.mrb[0].mxu0 %v671_v9  ;;  %439 = vmatpush1.bf16.msra.mxu1 %v702_v58 }
  0x59   :  { %648 = vmatprep.mubr.msk.bf16.mxu0 %vm814_vm0, %v813_v0  ;;  %633 = vmatpush3.bf16.msra.mxu0 %v675_v29 }
  0x5a   :  { %634 = vmatprep.subr.bf16.mxu0 %v813_v0 }
  0x5d   :  { %635 = vmatpush3.bf16.msra.mxu0 %v679_v40 }
  0x5e   :  { %636 = vmatprep.subr.bf16.mxu0 %v813_v0 }
  0x61   :  { %637 = vmatpush3.bf16.msra.mxu0 %v683_v43 }
  0x62   :  { %638 = vmatprep.subr.bf16.mxu0 %v813_v0 }
  0x65   :  { %639 = vmatpush3.bf16.msra.mxu0 %v687_v46 }
  0x66   :  { %640 = vmatprep.subr.bf16.mxu0 %v813_v0 }
  0x69   :  { %641 = vmatpush3.bf16.msra.mxu0 %v691_v49 }
  0x6a   :  { %642 = vmatprep.subr.bf16.mxu0 %v813_v0 }
  0x6d   :  { %643 = vmatpush3.bf16.msra.mxu0 %v695_v52 }
  0x6e   :  { %644 = vmatprep.subr.bf16.mxu0 %v813_v0 }
  0x71   :  { %645 = vmatpush3.bf16.msra.mxu0 %v699_v56 }
  0x72   :  { %646 = vmatprep.subr.bf16.mxu0 %v813_v0 }
  0x75   :  { %647 = vmatpush3.bf16.msra.mxu0 %v703_v59 }
 0x12b   :  { %v186_v11 = vpop.f32.mrb[0].mxu0 }
 0x12c   :  { %v187_v12 = vadd.f32 %v550_v10, %v186_v11  ;;  %v630_v13 = vpop.f32.mrb[1].mxu0 }
 0x12d   :  { %v189_v14 = vpop.f32.mrb[2].mxu0  ;;  %v281_v13 = vlaneseq }
 0x12e   :  { %v195_v15 = vmul.f32 0.70710677, %v187_v12  ;;  %v190_v16 = vadd.f32 %v550_v10, %v189_v14  ;;  %v631_v17 = vpop.f32.mrb[3].mxu0  ;;  %v193_v20 = vmul.f32 0.5, %v187_v12 }
 0x12f   :  { %v282_v14 = vshrl.u32 %v281_v13, 7  ;;  %v279_v17 = vld [vmem:[%s966_s6] sm:$0x7]  ;;  %s537_s6 = sshll.u32 %s816_s4, 4  ;;  %s538_s6 = int_to_ptr.vmem [resolvable:$true] %s537_s6 }
 0x130   :  { %704 = verf.f32 %v195_v15  ;;  %v196_v18 = vmul.f32 0.70710677, %v190_v16  ;;  %v194_v25 = vmul.f32 0.5, %v190_v16  ;;  %s778_s21 = scalar_lea.vmem %s538_s6, 384  ;;  %p783_p11 = scmp.lt.s32.totalorder %s538_s6, %s538_s6 }
 0x131   :  { %v283_v15 = vsub.s32 0, %v282_v14  ;;  %v291_v16 = vsub.s32 2, %v282_v14  ;;  %p779_p10 = scmp.ne.s32.totalorder %s538_s6, %s778_s21  ;;  %p784_p12 = scmp.lt.s32.totalorder %s778_s21, %s778_s21 }
 0x132   :  { %706 = verf.f32 %v196_v18  ;;  %v287_v18 = vsub.s32 1, %v282_v14 }
 0x133   :  { %p785_p13 = por %p784_p12, %p783_p11 }
 0x135   :  { %p786_p0 = pnand %p785_p13, %p779_p10 }
 0x13a   :  { %v705_v19 = vpop.eup %704 }
 0x13b   :  { %v199_v21 = vadd.f32 1.0, %v705_v19  ;;  %v284_v19 = vrot.slane %v279_v17, %v283_v15 }
 0x13c   :  { %v707_v22 = vpop.eup %706 }
 0x13d   :  { %v201_v23 = vmul.f32 %v199_v21, %v193_v20  ;;  %v200_v24 = vadd.f32 1.0, %v707_v22  ;;  %v292_v20 = vrot.slane %v279_v17, %v291_v16  ;;  %v288_v21 = vrot.slane %v279_v17, %v287_v18 }
 0x13f   :  { %203 = vadd.xlane.f32.xlu0 %v201_v23  ;;  %v202_v26 = vmul.f32 %v200_v24, %v194_v25 }
 0x143   :  { %205 = vadd.xlane.f32.xlu0 %v202_v26 }
 0x1cc   :  { %v204_v31 = vpop.xlane.xlu0 %203 }
 0x1cd   :  { %v208_v32 = vmul.f32 0.0078125, %v204_v31 }
 0x1cf   :  { %v920_v33 = vsub.f32 %v201_v23, %v208_v32 }
 0x1d0   :  { %v206_v34 = vpop.xlane.xlu0 %205 }
 0x1d1   :  { %v209_v35 = vmul.f32 0.0078125, %v206_v34  ;;  %v212_v36 = vmul.f32 %v920_v33, %v920_v33 }
 0x1d3   :  { %v924_v37 = vsub.f32 %v202_v26, %v209_v35  ;;  %214 = vadd.xlane.f32.xlu1 %v212_v36 }
 0x1d5   :  { %v213_v38 = vmul.f32 %v924_v37, %v924_v37 }
 0x1d7   :  { %216 = vadd.xlane.f32.xlu1 %v213_v38 }
 0x260   :  { %v215_v60 = vpop.xlane.xlu1 %214 }
 0x261   :  { %v218_v61 = vmul.f32 0.0078125, %v215_v60 }
 0x263   :  { %v220_v62 = vadd.f32 1e-12, %v218_v61 }
 0x264   :  { %v217_v63 = vpop.xlane.xlu1 %216 }
 0x265   :  { %708 = vrsqrt.f32 %v220_v62  ;;  %v219_v1 = vmul.f32 0.0078125, %v217_v63 }
 0x267   :  { %v221_v2 = vadd.f32 1e-12, %v219_v1 }
 0x269   :  { %710 = vrsqrt.f32 %v221_v2 }
 0x26f   :  { %v709_v3 = vpop.eup %708 }
 0x270   :  { %v224_v4 = vmul.f32 %v709_v3, %v920_v33 }
 0x272   :  { %v233_v7 = vmul.f32 %v560_v5, %v224_v4 }
 0x273   :  { %v711_v6 = vpop.eup %710 }
 0x274   :  { %v225_v0 = vmul.f32 %v711_v6, %v924_v37  ;;  %v242_v10 = vadd.f32 %v561_v8, %v233_v7 }
 0x276   :  { %v234_v9 = vmul.f32 %v560_v5, %v225_v0 }
 0x278   :  { %v243_v11 = vadd.f32 %v561_v8, %v234_v9 }
 0x27a   :  { %v244_v12 = vpack.c.bf16 %v243_v11, %v242_v10 }
 0x27c   :  { %457 = vmatmul.mubr.bf16.vlgmr.msra.gmra.mrb[0].mxu1 %v244_v12  ;;  %649 = vmatmul.mubr.bf16.vlgmr.msra.gmra.mrb[4].mxu0 %v244_v12 }
 0x34f   :  { %v458_v22 = vpop.f32.mrb[0].mxu1  ;;  %v501_v23 = vpop.f32.mrb[4].mxu0 }
 0x350   :  { %v459_v24 = vadd.f32 %v458_v22, %v284_v19  ;;  %v502_v25 = vadd.f32 %v501_v23, %v292_v20  ;;  %v460_v26 = vpop.f32.mrb[1].mxu1  ;;  %v650_v27 = vpop.f32.mrb[5].mxu0 }
 0x351   :  { %v461_v28 = vadd.f32 %v460_v26, %v288_v21  ;;  %v462_v29 = vpop.f32.mrb[2].mxu1  ;;  %v504_v30 = vpop.f32.mrb[6].mxu0 }
 0x352   :  { %v591_v31 = vpack.c.bf16 %v502_v25, %v502_v25  ;;  %v463_v32 = vadd.f32 %v462_v29, %v284_v19  ;;  %v505_v33 = vadd.f32 %v504_v30, %v292_v20  ;;  %v464_v34 = vpop.f32.mrb[3].mxu1  ;;  %v651_v35 = vpop.f32.mrb[7].mxu0 }
 0x353   :  { %v590_v36 = vpack.c.bf16 %v461_v28, %v459_v24  ;;  %v465_v37 = vadd.f32 %v464_v34, %v288_v21 }
 0x354   :  { %529 = vst [vmem:[#allocation9 + $0x8] sm:$0xf] %v591_v31  ;;  %v593_v38 = vpack.c.bf16 %v505_v33, %v505_v33 }
 0x355   :  { %528 = vst [vmem:[#allocation9] sm:$0xff] %v590_v36  ;;  %v592_v39 = vpack.c.bf16 %v465_v37, %v463_v32 }
 0x356   :  { %531 = vst [vmem:[#allocation9 + $0x14] sm:$0xf] %v593_v38 }
 0x357   :  { %530 = vst [vmem:[#allocation9 + $0xc] sm:$0xff] %v592_v39 }
 0x358   :  { %789 = shalt.err (!%p786_p0)
}
 0x359   :  { %s790_s24 = scalar_lea.hbm %s967_s7, 384 }
 0x35a   :  { %p791_p1 = scmp.ne.s32.totalorder %s967_s7, %s790_s24  ;;  %p794_p2 = scmp.lt.u32.totalorder %s790_s24, %s967_s7 }
 0x35c   :  { %p796_p3 = pnand %p794_p2, %p791_p1 }
 0x35e   :  { %799 = shalt.err (!%p796_p3)
}
 0x35f   :  { %543 = dma.vmem_to_hbm [thread:$0]  %s538_s6, 384, %s967_s7, [#allocation5], %s811_s0, %s811_s0, %s812_s27  }
 0x360   :  { %804 = dma.done.wait [#allocation5], 384  }
 0x361   :  { %805 = vsyncadd [#allocation5], 4294966912 }
 0x362   :  { %547 = vsyncpa [#allocation4], 1 }
 0x363   :  { %548 = vsyncpa [#allocation7], 1 }
 0x364   :  { %549 = vsyncpa [#allocation5], 1 }

</bundles_post_ra>
